<compile_context>
chip_gen: v7x
topology: tpu7x:2x2x1
jax: 0.10.0
libtpu: 0.0.40
codegen_flags: <defaults>
</compile_context>

<pallas_src>
import functools

import jax
import jax.numpy as jnp
from jax.experimental import pallas as pl
from jax.experimental.pallas import tpu as pltpu

_LANES = 128
_SUBLANES = 8
# Budget for (2 inputs x 2 pipeline buffers): stays well inside v5e's 16 MiB
# default scoped VMEM and v7x's 64 MiB physical VMEM.
_VMEM_INPUT_BUDGET = 8 * 1024 * 1024
# Padded logits map to sigmoid(-80) = 1/(1+exp(80)) ~ 1.8e-35 (exp(80) is
# finite in f32, so the explicit-sigmoid form never sees inf from padding).
_PAD_LOGIT = -80.0


def _round_up(x, m):
    return ((x + m - 1) // m) * m


def _dice_kernel(logits_ref, targets_ref, inter_ref, denom_ref, *,
                 block_rows, total_rows, ragged):
    """One grid step: stream a (block_rows, 128) tile of logits/targets and fold
    it into the resident (8, 128) output accumulators."""
    step = pl.program_id(0)

    @pl.when(step == 0)
    def _():
        inter_ref[...] = jnp.zeros_like(inter_ref)
        denom_ref[...] = jnp.zeros_like(denom_ref)

    x = logits_ref[...].astype(jnp.float32)
    # Explicit sigmoid: one EUP exp + one EUP approx reciprocal + one VPU add.
    preds = pl.reciprocal(1.0 + jnp.exp(-x), approx=True)
    targs = targets_ref[...].astype(jnp.float32)

    if ragged:
        # Last block may read past the end of the array (unspecified values):
        # zero out rows >= total_rows before they touch the accumulators.
        row = step * block_rows + jax.lax.broadcasted_iota(
            jnp.int32, (block_rows, _LANES), 0)
        valid = row < total_rows
        preds = jnp.where(valid, preds, 0.0)
        targs = jnp.where(valid, targs, 0.0)

    # (block_rows, 128) -> (block_rows//8, 8, 128) is a tile-aligned regrouping
    # of the sublane dim (no data movement); the axis-0 sum is vreg-wise VPU adds.
    inter_ref[...] += jnp.sum((preds * targs).reshape(-1, _SUBLANES, _LANES), axis=0)
    denom_ref[...] += jnp.sum((preds + targs).reshape(-1, _SUBLANES, _LANES), axis=0)


def dice_loss(logits, targets, smooth=1e-6, *, block_rows_cap=None):
    """Pallas implementation of DiceLoss.forward (returns a scalar, f32)."""
    flat_l = logits.reshape(-1)
    flat_t = targets.reshape(-1)

    # Logits: keep f32/bf16 as-is (upcast in-kernel); anything else -> f32.
    if flat_l.dtype not in (jnp.float32, jnp.bfloat16):
        flat_l = flat_l.astype(jnp.float32)
    # Targets: stream at native width when cheap (bool -> int8 = 1 B/elem).
    if flat_t.dtype == jnp.bool_:
        flat_t = flat_t.astype(jnp.int8)
    elif flat_t.dtype not in (jnp.float32, jnp.bfloat16, jnp.int8, jnp.uint8):
        flat_t = flat_t.astype(jnp.float32)

    n = flat_l.shape[0]
    n_padded = _round_up(n, _SUBLANES * _LANES)      # multiple of 1024
    if n_padded != n:
        # Rare ragged-element-count case only; pad values contribute ~0 to all
        # sums, so no mask stream is needed for the padded lanes.
        flat_l = jnp.pad(flat_l, (0, n_padded - n), constant_values=_PAD_LOGIT)
        flat_t = jnp.pad(flat_t, (0, n_padded - n), constant_values=0)

    rows = n_padded // _LANES                        # always a multiple of 8

    # Dtype-aware block sizing within the VMEM budget (multiple of 32 so int8 /
    # bf16 sublane packing stays tile-aligned).
    bytes_per_row = _LANES * (flat_l.dtype.itemsize + flat_t.dtype.itemsize)
    cap_rows = max(32, (_VMEM_INPUT_BUDGET // (2 * bytes_per_row)) // 32 * 32)
    if block_rows_cap is not None:                   # testing hook
        cap_rows = max(_SUBLANES, (block_rows_cap // _SUBLANES) * _SUBLANES)
    block_rows = rows if rows <= cap_rows else cap_rows
    steps = pl.cdiv(rows, block_rows)
    ragged = steps * block_rows != rows              # in-kernel row mask needed

    kernel = functools.partial(_dice_kernel, block_rows=block_rows,
                               total_rows=rows, ragged=ragged)

    acc_shape = jax.ShapeDtypeStruct((_SUBLANES, _LANES), jnp.float32)
    in_spec = pl.BlockSpec((block_rows, _LANES), lambda i: (i, 0))
    out_spec = pl.BlockSpec((_SUBLANES, _LANES), lambda i: (0, 0))

    inter_p, denom_p = pl.pallas_call(
        kernel,
        out_shape=(acc_shape, acc_shape),
        grid_spec=pltpu.PrefetchScalarGridSpec(
            num_scalar_prefetch=0,
            grid=(steps,),
            in_specs=[in_spec, in_spec],
            out_specs=(out_spec, out_spec),
        ),
        compiler_params=pltpu.CompilerParams(
            dimension_semantics=("arbitrary",),
        ),
    )(flat_l.reshape(rows, _LANES), flat_t.reshape(rows, _LANES))

    # Tiny epilogue: reduce 2 x (8, 128) partials and form the dice ratio.
    inter = jnp.sum(inter_p)
    denom = jnp.sum(denom_p)
    return 1.0 - (2.0 * inter + smooth) / (denom + smooth)


def dice_loss_ref(logits, targets, smooth=1e-6):
    preds = jax.nn.sigmoid(logits.astype(jnp.float32)).reshape(-1)
    targs = targets.astype(jnp.float32).reshape(-1)
    inter = jnp.sum(preds * targs)
    return 1.0 - (2.0 * inter + smooth) / (jnp.sum(preds) + jnp.sum(targs) + smooth)


if __name__ == "__main__":
    key = jax.random.PRNGKey(0)
    k1, k2, k3, k4, k5, k6, k7, k8 = jax.random.split(key, 8)

    # Loose enough to absorb the EUP approximate-reciprocal sigmoid, tight
    # enough to catch any real bug (loss values are O(0.5)).
    tol = dict(atol=2e-3, rtol=2e-3)

    # 1) Exact-fit path (n % 1024 == 0), single grid step (NCHW segmentation shape).
    logits = jax.random.normal(k1, (2, 4, 16, 16), dtype=jnp.float32)
    targets = (jax.random.uniform(k2, (2, 4, 16, 16)) > 0.5).astype(jnp.float32)
    out = jax.block_until_ready(dice_loss(logits, targets))
    ref = dice_loss_ref(logits, targets)
    assert jnp.allclose(out, ref, **tol), (out, ref)

    # 2) Ragged element count -> value-safe lane padding path.
    logits2 = jax.random.normal(k3, (1, 3, 7, 9), dtype=jnp.float32)
    targets2 = (jax.random.uniform(k4, (1, 3, 7, 9)) > 0.5).astype(jnp.float32)
    out2 = jax.block_until_ready(dice_loss(logits2, targets2))
    ref2 = dice_loss_ref(logits2, targets2)
    assert jnp.allclose(out2, ref2, **tol), (out2, ref2)

    # 3) bf16 logits + bool targets -> bf16 / int8 HBM streams, upcast in-kernel.
    logits3 = jax.random.normal(k5, (2, 4, 32, 32), dtype=jnp.bfloat16)
    targets3 = jax.random.uniform(k6, (2, 4, 32, 32)) > 0.5
    out3 = jax.block_until_ready(dice_loss(logits3, targets3))
    ref3 = dice_loss_ref(logits3, targets3)
    assert jnp.allclose(out3, ref3, **tol), (out3, ref3)

    # 4) Multi-step grid + in-kernel row masking (forced small block cap).
    logits4 = jax.random.normal(k7, (1, 3, 40, 25), dtype=jnp.float32)
    targets4 = (jax.random.uniform(k8, (1, 3, 40, 25)) > 0.5).astype(jnp.float32)
    out4 = jax.block_until_ready(dice_loss(logits4, targets4, block_rows_cap=16))
    ref4 = dice_loss_ref(logits4, targets4)
    assert jnp.allclose(out4, ref4, **tol), (out4, ref4)

    print("KERNEL_OK")
</pallas_src>

<mosaic_0001>
module attributes {stable_mosaic.version = 11 : i64} {
  func.func @_dice_kernel(%arg0: i32, %arg1: memref<16x128xf32, #tpu.memory_space<vmem>>, %arg2: memref<16x128xf32, #tpu.memory_space<vmem>>, %arg3: memref<8x128xf32, #tpu.memory_space<vmem>>, %arg4: memref<8x128xf32, #tpu.memory_space<vmem>>) attributes {dimension_semantics = [#tpu.dimension_semantics<arbitrary>], iteration_bounds = array<i64: 1>, scalar_prefetch = 0 : i64, scratch_operands = 0 : i64, tpu.core_type = #tpu.core_type<tc>, window_params = [{transform_indices = @transform_0, window_bounds = array<i64: 16, 128>}, {transform_indices = @transform_1, window_bounds = array<i64: 16, 128>}, {pipeline_mode = #tpu.pipeline_mode<synchronous>, transform_indices = @transform_2, window_bounds = array<i64: 8, 128>}, {pipeline_mode = #tpu.pipeline_mode<synchronous>, transform_indices = @transform_3, window_bounds = array<i64: 8, 128>}]} {
    %c0_i32 = arith.constant 0 : i32
    %0 = arith.cmpi eq, %arg0, %c0_i32 : i32
    %1 = arith.extui %0 : i1 to i32
    %c0_i32_0 = arith.constant 0 : i32
    %2 = arith.cmpi ne, %1, %c0_i32_0 : i32
    scf.if %2 {
      %cst_15 = arith.constant 0.000000e+00 : f32
      %23 = vector.broadcast %cst_15 : f32 to vector<8x128xf32>
      %c0_16 = arith.constant 0 : index
      %c0_17 = arith.constant 0 : index
      %24 = vector.load %arg3[%c0_16, %c0_17] : memref<8x128xf32, #tpu.memory_space<vmem>>, vector<8x128xf32>
      tpu.vector_store %arg3[%c0_16, %c0_17], %23 {strides = array<i32>} : memref<8x128xf32, #tpu.memory_space<vmem>>, vector<8x128xf32>,
      %cst_18 = arith.constant 0.000000e+00 : f32
      %25 = vector.broadcast %cst_18 : f32 to vector<8x128xf32>
      %c0_19 = arith.constant 0 : index
      %c0_20 = arith.constant 0 : index
      %26 = vector.load %arg4[%c0_19, %c0_20] : memref<8x128xf32, #tpu.memory_space<vmem>>, vector<8x128xf32>
      tpu.vector_store %arg4[%c0_19, %c0_20], %25 {strides = array<i32>} : memref<8x128xf32, #tpu.memory_space<vmem>>, vector<8x128xf32>,
    } else {
    }
    %c0 = arith.constant 0 : index
    %c0_1 = arith.constant 0 : index
    %3 = vector.load %arg1[%c0, %c0_1] : memref<16x128xf32, #tpu.memory_space<vmem>>, vector<16x128xf32>
    %cst = arith.constant 0.000000e+00 : f32
    %4 = vector.broadcast %cst : f32 to vector<16x128xf32>
    %5 = arith.subf %4, %3 : vector<16x128xf32>
    %6 = math.exp %5 : vector<16x128xf32>
    %cst_2 = arith.constant 1.000000e+00 : f32
    %7 = vector.broadcast %cst_2 : f32 to vector<16x128xf32>
    %8 = arith.addf %7, %6 : vector<16x128xf32>
    %9 = tpu.reciprocal %8 {approx = true} : vector<16x128xf32> -> vector<16x128xf32>
    %c0_3 = arith.constant 0 : index
    %c0_4 = arith.constant 0 : index
    %10 = vector.load %arg2[%c0_3, %c0_4] : memref<16x128xf32, #tpu.memory_space<vmem>>, vector<16x128xf32>
    %c0_5 = arith.constant 0 : index
    %c0_6 = arith.constant 0 : index
    %11 = vector.load %arg3[%c0_5, %c0_6] : memref<8x128xf32, #tpu.memory_space<vmem>>, vector<8x128xf32>
    %12 = arith.mulf %9, %10 : vector<16x128xf32>
    %13 = vector.shape_cast %12 : vector<16x128xf32> to vector<2x8x128xf32>
    %cst_7 = arith.constant dense<0.000000e+00> : vector<8x128xf32>
    %14 = vector.multi_reduction <add>, %13, %cst_7 [0] : vector<2x8x128xf32> to vector<8x128xf32>
    %15 = arith.addf %11, %14 : vector<8x128xf32>
    %c0_8 = arith.constant 0 : index
    %c0_9 = arith.constant 0 : index
    %16 = vector.load %arg3[%c0_8, %c0_9] : memref<8x128xf32, #tpu.memory_space<vmem>>, vector<8x128xf32>
    tpu.vector_store %arg3[%c0_8, %c0_9], %15 {strides = array<i32>} : memref<8x128xf32, #tpu.memory_space<vmem>>, vector<8x128xf32>,
    %c0_10 = arith.constant 0 : index
    %c0_11 = arith.constant 0 : index
    %17 = vector.load %arg4[%c0_10, %c0_11] : memref<8x128xf32, #tpu.memory_space<vmem>>, vector<8x128xf32>
    %18 = arith.addf %9, %10 : vector<16x128xf32>
    %19 = vector.shape_cast %18 : vector<16x128xf32> to vector<2x8x128xf32>
    %cst_12 = arith.constant dense<0.000000e+00> : vector<8x128xf32>
    %20 = vector.multi_reduction <add>, %19, %cst_12 [0] : vector<2x8x128xf32> to vector<8x128xf32>
    %21 = arith.addf %17, %20 : vector<8x128xf32>
    %c0_13 = arith.constant 0 : index
    %c0_14 = arith.constant 0 : index
    %22 = vector.load %arg4[%c0_13, %c0_14] : memref<8x128xf32, #tpu.memory_space<vmem>>, vector<8x128xf32>
    tpu.vector_store %arg4[%c0_13, %c0_14], %21 {strides = array<i32>} : memref<8x128xf32, #tpu.memory_space<vmem>>, vector<8x128xf32>,
    return
  }
  func.func @transform_0(%arg0: i32) -> (i32, i32) {
    %c0_i32 = arith.constant 0 : i32
    %c0_i32_0 = arith.constant 0 : i32
    return %arg0, %c0_i32 : i32, i32
  }
  func.func @transform_1(%arg0: i32) -> (i32, i32) {
    %c0_i32 = arith.constant 0 : i32
    %c0_i32_0 = arith.constant 0 : i32
    return %arg0, %c0_i32 : i32, i32
  }
  func.func @transform_2(%arg0: i32) -> (i32, i32) {
    %c0_i32 = arith.constant 0 : i32
    %c0_i32_0 = arith.constant 0 : i32
    %c0_i32_1 = arith.constant 0 : i32
    return %c0_i32, %c0_i32_0 : i32, i32
  }
  func.func @transform_3(%arg0: i32) -> (i32, i32) {
    %c0_i32 = arith.constant 0 : i32
    %c0_i32_0 = arith.constant 0 : i32
    %c0_i32_1 = arith.constant 0 : i32
    return %c0_i32, %c0_i32_0 : i32, i32
  }
}

</mosaic_0001>

<bundles_post_ra>
// kernel: tpu_custom_call.1
= control target key start
LH: loop header
LB: loop body
LE: loop exit
PB: predicated region body
PF: predicated region fallthrough
CT: control target
= control target key end

     0   :  { %9 = vsyncpa [#allocation3], 0  ;;  %s290_s0 = inlined_call_operand.hbm [shape: f32[16,128], index: 0, kind: input, shape index: {}]   ;;  %s291_s1 = inlined_call_operand.hbm [shape: f32[16,128], index: 1, kind: input, shape index: {}]   ;;  %s292_s2 = inlined_call_operand.hbm [shape: f32[8,128], index: 2, kind: output, shape index: {0}]   ;;  %s293_s3 = inlined_call_operand.hbm [shape: f32[8,128], index: 3, kind: output, shape index: {1}]  }
   0x1   :  { %10 = vsyncpa [#allocation6], 0 }
   0x2   :  { %11 = vsyncpa [#allocation4], 0 }
   0x3   :  { %12 = vsyncpa [#allocation9], 0  ;;  %s216_s12 = smov [#allocation2]   ;;  %s120_s16 = scalar_lea.hbm %s290_s0, 256 }
   0x4   :  { %s18_s13 = sshll.u32 %s216_s12, 4  ;;  %p121_p0 = scmp.ne.s32.totalorder %s290_s0, %s120_s16  ;;  %s19_s13 = int_to_ptr.vmem [resolvable:$true] %s18_s13 }
   0x5   :  { %p124_p1 = scmp.lt.u32.totalorder %s120_s16, %s290_s0 }
   0x7   :  { %p126_p2 = pnand %p124_p1, %p121_p0 }
   0x9   :  { %129 = shalt.err (!%p126_p2)
}
   0xa   :  { %s130_s21 = scalar_lea.vmem %s19_s13, 256  ;;  %p135_p4 = scmp.lt.s32.totalorder %s19_s13, %s19_s13 }
   0xb   :  { %p131_p3 = scmp.ne.s32.totalorder %s19_s13, %s130_s21  ;;  %p136_p5 = scmp.lt.s32.totalorder %s130_s21, %s130_s21 }
   0xd   :  { %p137_p6 = por %p136_p5, %p135_p4 }
   0xf   :  { %p138_p7 = pnand %p137_p6, %p131_p3 }
  0x11   :  { %141 = shalt.err (!%p138_p7)
}
  0x12   :  { %s217_s22 = smov 128   ;;  %s218_s23 = smov 8  }
  0x13   :  { %24 = dma.hbm_to_vmem [thread:$0]  %s290_s0, 256, %s19_s13, [#allocation3], %s217_s22, %s217_s22, %s218_s23  }
  0x14   :  { %s219_s26 = smov [#allocation5]   ;;  %s142_s30 = scalar_lea.hbm %s291_s1, 256 }
  0x15   :  { %s30_s27 = sshll.u32 %s219_s26, 4  ;;  %p143_p8 = scmp.ne.s32.totalorder %s291_s1, %s142_s30  ;;  %s31_s27 = int_to_ptr.vmem [resolvable:$true] %s30_s27 }
  0x16   :  { %p146_p9 = scmp.lt.u32.totalorder %s142_s30, %s291_s1 }
  0x18   :  { %p148_p10 = pnand %p146_p9, %p143_p8 }
  0x1a   :  { %151 = shalt.err (!%p148_p10)
}
  0x1b   :  { %s152_s8 = scalar_lea.vmem %s31_s27, 256  ;;  %p157_p12 = scmp.lt.s32.totalorder %s31_s27, %s31_s27 }
  0x1c   :  { %p153_p11 = scmp.ne.s32.totalorder %s31_s27, %s152_s8  ;;  %p158_p13 = scmp.lt.s32.totalorder %s152_s8, %s152_s8 }
  0x1e   :  { %p159_p0 = por %p158_p13, %p157_p12 }
  0x20   :  { %p160_p1 = pnand %p159_p0, %p153_p11 }
  0x22   :  { %163 = shalt.err (!%p160_p1)
}
  0x23   :  { %36 = dma.hbm_to_vmem [thread:$0]  %s291_s1, 256, %s31_s27, [#allocation6], %s217_s22, %s217_s22, %s218_s23  }
  0x24   :  { %208 = dma.done.wait [#allocation3], 256  }
  0x25   :  { %209 = vsyncadd [#allocation3], 4294967040 }
  0x26   :  { %210 = dma.done.wait [#allocation6], 256  }
  0x27   :  { %211 = vsyncadd [#allocation6], 4294967040  ;;  %v49_v0 = vld [vmem:[#allocation2] sm:$0xff]  ;;  %v50_v1 = vld [vmem:[#allocation2 + $0x8] sm:$0xff]  ;;  %s220_s1 = smov [#allocation7]   ;;  %s221_s11 = smov [#allocation8]  }
  0x28   :  { %v51_v2 = vsub.f32 0.0, %v49_v0  ;;  %v52_v3 = vsub.f32 0.0, %v50_v1  ;;  %v61_v10 = vld [vmem:[#allocation5] sm:$0xff]  ;;  %v62_v11 = vld [vmem:[#allocation5 + $0x8] sm:$0xff]  ;;  %s81_s10 = sshll.u32 %s220_s1, 4  ;;  %s91_s12 = sshll.u32 %s221_s11, 4  ;;  %s82_s10 = int_to_ptr.vmem [resolvable:$true] %s81_s10  ;;  %s92_s12 = int_to_ptr.vmem [resolvable:$true] %s91_s12 }
  0x29   :  { %s164_s13 = scalar_lea.vmem %s82_s10, 128  ;;  %p169_p3 = scmp.lt.s32.totalorder %s82_s10, %s82_s10 }
  0x2a   :  { %v53_v4 = vmul.f32 1.442695, %v51_v2  ;;  %v55_v5 = vmul.f32 1.442695, %v52_v3  ;;  %p165_p2 = scmp.ne.s32.totalorder %s82_s10, %s164_s13  ;;  %p170_p4 = scmp.lt.s32.totalorder %s164_s13, %s164_s13 }
  0x2c   :  { %112 = vpow2.f32 %v53_v4  ;;  %p171_p5 = por %p170_p4, %p169_p3 }
  0x2d   :  { %114 = vpow2.f32 %v55_v5 }
  0x2e   :  { %p172_p6 = pnand %p171_p5, %p165_p2 }
  0x36   :  { %v113_v6 = vpop.eup %112 }
  0x37   :  { %v115_v7 = vpop.eup %114  ;;  %v57_v8 = vadd.f32 1.0, %v113_v6 }
  0x38   :  { %v58_v9 = vadd.f32 1.0, %v115_v7 }
  0x39   :  { %116 = vrcp.f32 %v57_v8 }
  0x3a   :  { %118 = vrcp.f32 %v58_v9 }
  0x43   :  { %v117_v12 = vpop.eup %116 }
  0x44   :  { %v119_v13 = vpop.eup %118  ;;  %v64_v14 = vmul.f32 %v117_v12, %v61_v10  ;;  %v70_v15 = vadd.f32 %v117_v12, %v61_v10 }
  0x45   :  { %v65_v16 = vmul.f32 %v119_v13, %v62_v11  ;;  %v71_v17 = vadd.f32 %v119_v13, %v62_v11 }
  0x47   :  { %v66_v18 = vadd.f32 %v65_v16, %v64_v14  ;;  %v72_v19 = vadd.f32 %v71_v17, %v70_v15 }
  0x49   :  { %68 = vst [vmem:[#allocation7] sm:$0xff] %v66_v18  ;;  %74 = vst [vmem:[#allocation8] sm:$0xff] %v72_v19 }
  0x4a   :  { %175 = shalt.err (!%p172_p6)
}
  0x4b   :  { %s176_s16 = scalar_lea.hbm %s292_s2, 128 }
  0x4c   :  { %p177_p7 = scmp.ne.s32.totalorder %s292_s2, %s176_s16  ;;  %p180_p8 = scmp.lt.u32.totalorder %s176_s16, %s292_s2 }
  0x4e   :  { %p182_p9 = pnand %p180_p8, %p177_p7 }
  0x50   :  { %185 = shalt.err (!%p182_p9)
}
  0x51   :  { %84 = dma.vmem_to_hbm [thread:$0]  %s82_s10, 128, %s292_s2, [#allocation4]  }
  0x52   :  { %s186_s23 = scalar_lea.vmem %s92_s12, 128  ;;  %p191_p11 = scmp.lt.s32.totalorder %s92_s12, %s92_s12 }
  0x53   :  { %p187_p10 = scmp.ne.s32.totalorder %s92_s12, %s186_s23  ;;  %p192_p12 = scmp.lt.s32.totalorder %s186_s23, %s186_s23 }
  0x55   :  { %p193_p13 = por %p192_p12, %p191_p11 }
  0x57   :  { %p194_p0 = pnand %p193_p13, %p187_p10 }
  0x59   :  { %197 = shalt.err (!%p194_p0)
}
  0x5a   :  { %s198_s26 = scalar_lea.hbm %s293_s3, 128 }
  0x5b   :  { %p199_p1 = scmp.ne.s32.totalorder %s293_s3, %s198_s26  ;;  %p202_p2 = scmp.lt.u32.totalorder %s198_s26, %s293_s3 }
  0x5d   :  { %p204_p3 = pnand %p202_p2, %p199_p1 }
  0x5f   :  { %207 = shalt.err (!%p204_p3)
}
  0x60   :  { %94 = dma.vmem_to_hbm [thread:$0]  %s92_s12, 128, %s293_s3, [#allocation9]  }
  0x61   :  { %212 = dma.done.wait [#allocation4], 128  }
  0x62   :  { %213 = vsyncadd [#allocation4], 4294967168 }
  0x63   :  { %214 = dma.done.wait [#allocation9], 128  }
  0x64   :  { %215 = vsyncadd [#allocation9], 4294967168 }
  0x65   :  { %101 = vsyncpa [#allocation3], 1 }
  0x66   :  { %102 = vsyncpa [#allocation6], 1 }
  0x67   :  { %103 = vsyncpa [#allocation4], 1 }
  0x68   :  { %104 = vsyncpa [#allocation9], 1 }

</bundles_post_ra>
